<compile_context>
chip_gen: v7x
topology: tpu7x:2x2x1
jax: 0.10.0
libtpu: 0.0.40
codegen_flags: <defaults>
</compile_context>

<pallas_src>
import functools

import jax
import jax.numpy as jnp
from jax import lax
from jax.experimental import pallas as pl
from jax.experimental.pallas import tpu as pltpu


def _pick_tile(total, candidates):
    for c in candidates:
        if c <= total and total % c == 0:
            return c
    return total


# -----------------------------------------------------------------------------
# Kernel 1: streaming per-(n, c) InstanceNorm statistics.
#   x: (N, C, S) tiled over S ("arbitrary"); accumulators in VMEM scratch;
#   output stats: (N, C, 2) = [mean, 1/sqrt(var + eps)] in f32.
# -----------------------------------------------------------------------------
def _stats_kernel(x_ref, stats_ref, sum_ref, sq_ref, *, inv_count, eps):
    s = pl.program_id(1)

    @pl.when(s == 0)
    def _():
        sum_ref[...] = jnp.zeros_like(sum_ref)
        sq_ref[...] = jnp.zeros_like(sq_ref)

    xb = x_ref[0].astype(jnp.float32)                      # (C, tS)
    sum_ref[...] += jnp.sum(xb, axis=-1, keepdims=True)     # (C, 1)
    sq_ref[...] += jnp.sum(xb * xb, axis=-1, keepdims=True)

    @pl.when(s == pl.num_programs(1) - 1)
    def _():
        mean = sum_ref[...] * inv_count
        var = sq_ref[...] * inv_count - mean * mean          # biased variance
        var = jnp.maximum(var, 0.0)
        inv = lax.rsqrt(var + eps)
        stats_ref[0, :, 0:1] = mean
        stats_ref[0, :, 1:2] = inv


def instance_norm_stats(x_ncs, *, eps=1e-5):
    N, C, S = x_ncs.shape
    ts = _pick_tile(S, (4096, 2048, 1024, 512, 256, 128))
    kernel = functools.partial(_stats_kernel, inv_count=1.0 / S, eps=eps)
    return pl.pallas_call(
        kernel,
        out_shape=jax.ShapeDtypeStruct((N, C, 2), jnp.float32),
        grid=(N, S // ts),
        in_specs=[pl.BlockSpec((1, C, ts), lambda n, s: (n, 0, s))],
        out_specs=pl.BlockSpec((1, C, 2), lambda n, s: (n, 0, 0)),
        scratch_shapes=[
            pltpu.VMEM((C, 1), jnp.float32),
            pltpu.VMEM((C, 1), jnp.float32),
        ],
        compiler_params=pltpu.CompilerParams(
            dimension_semantics=("parallel", "arbitrary")
        ),
    )(x_ncs)


# -----------------------------------------------------------------------------
# Kernel 2: fused (InstanceNorm folded into weights) 2x2x2 stride-2 conv + bias.
#   patches: (N, 8*Cin, S_out)   (pure permutation of x, lane-dense spatial)
#   w_n:     (N, Cout, 8*Cin)    (per-sample norm-folded weight)
#   b_n:     (N, Cout, 1)        (per-sample norm-folded bias)
#   out:     (N, Cout, S_out)
# -----------------------------------------------------------------------------
def _norm_conv_kernel(p_ref, w_ref, b_ref, o_ref):
    y = jnp.dot(w_ref[0], p_ref[0], preferred_element_type=jnp.float32)  # (Cout, tS)
    o_ref[0] = (y + b_ref[0]).astype(o_ref.dtype)


def fused_norm_conv(patches, w_n, b_n):
    N, K, So = patches.shape
    Cout = w_n.shape[1]
    tso = _pick_tile(So, (2048, 1024, 512, 256, 128))
    return pl.pallas_call(
        _norm_conv_kernel,
        out_shape=jax.ShapeDtypeStruct((N, Cout, So), patches.dtype),
        grid=(N, So // tso),
        in_specs=[
            pl.BlockSpec((1, K, tso), lambda n, s: (n, 0, s)),
            pl.BlockSpec((1, Cout, K), lambda n, s: (n, 0, 0)),
            pl.BlockSpec((1, Cout, 1), lambda n, s: (n, 0, 0)),
        ],
        out_specs=pl.BlockSpec((1, Cout, tso), lambda n, s: (n, 0, s)),
        compiler_params=pltpu.CompilerParams(
            dimension_semantics=("parallel", "parallel")
        ),
    )(patches, w_n, b_n)


# -----------------------------------------------------------------------------
# Full forward: NormDownsample(x) = Conv3d_k2s2(InstanceNorm3d(x)) + bias
# -----------------------------------------------------------------------------
def norm_downsample(x, params):
    N, Cin, D, H, W = x.shape
    w = params["proj_w"]                      # (Cout, Cin, 2, 2, 2)
    b = params["proj_b"]                      # (Cout,)
    Cout = w.shape[0]
    assert D % 2 == 0 and H % 2 == 0 and W % 2 == 0
    S = D * H * W
    Do, Ho, Wo = D // 2, H // 2, W // 2
    So = Do * Ho * Wo

    # ---- Pallas kernel 1: streaming per-(n, c) mean / inv-std ----
    stats = instance_norm_stats(x.reshape(N, Cin, S))      # (N, Cin, 2) f32
    mean = stats[..., 0]                                    # (N, Cin)
    inv = stats[..., 1]                                     # (N, Cin)

    # ---- fold the (affine, per-sample) normalization into the conv weight ----
    # KB-sized XLA ops: w_n[n,co,j] = W[co,j] * inv[n, ci(j)],
    #                   b_n[n,co]   = bias[co] - sum_j w_n[n,co,j] * mean[n, ci(j)]
    w_mat = w.reshape(Cout, Cin * 8).astype(jnp.float32)    # j = ci*8 + kd*4+kh*2+kw
    scale_j = jnp.repeat(inv, 8, axis=1)                    # (N, 8*Cin)
    shift_j = jnp.repeat(mean, 8, axis=1)                   # (N, 8*Cin)
    w_n = w_mat[None, :, :] * scale_j[:, None, :]           # (N, Cout, 8*Cin)
    b_n = b.astype(jnp.float32)[None, :] - jnp.sum(
        w_n * shift_j[:, None, :], axis=-1
    )                                                       # (N, Cout)
    b_n = b_n[..., None]                                    # (N, Cout, 1)

    # ---- stride-2 patch permutation (zero expansion: same #elements as x) ----
    # TODO(synk): kept as one XLA permutation pass; doing the stride-2 shifted
    # views in-kernel would need lane/sublane-strided gathers from a halo tile.
    p = x.reshape(N, Cin, Do, 2, Ho, 2, Wo, 2)
    p = jnp.transpose(p, (0, 1, 3, 5, 7, 2, 4, 6)).reshape(N, Cin * 8, So)

    # ---- Pallas kernel 2: fused normalize + conv + bias (single deep-K matmul)
    out = fused_norm_conv(p, w_n, b_n)                      # (N, Cout, So)
    return out.reshape(N, Cout, Do, Ho, Wo)


# -----------------------------------------------------------------------------
# Deterministic parameter init (matches module __init__ shapes)
# -----------------------------------------------------------------------------
def init_params(key, in_channels, out_channels):
    kw, kb = jax.random.split(key, 2)
    proj_w = jax.random.normal(kw, (out_channels, in_channels, 2, 2, 2), jnp.float32) * 0.1
    proj_b = jax.random.normal(kb, (out_channels,), jnp.float32) * 0.1
    return dict(proj_w=proj_w, proj_b=proj_b)


if __name__ == "__main__":
    key = jax.random.PRNGKey(0)
    kx, kp = jax.random.split(key, 2)

    N, Cin, Cout = 2, 16, 32
    D = H = W = 16                     # output spatial 8x8x8

    x = jax.random.normal(kx, (N, Cin, D, H, W), jnp.float32)
    params = init_params(kp, Cin, Cout)

    fwd = jax.jit(norm_downsample)
    out = fwd(x, params)
    jax.block_until_ready(out)
    assert out.shape == (N, Cout, D // 2, H // 2, W // 2)
    assert bool(jnp.all(jnp.isfinite(out)))

    # Pure-JAX reference (InstanceNorm3d + Conv3d k=2, s=2, bias) for sanity.
    mean = jnp.mean(x, axis=(2, 3, 4), keepdims=True)
    var = jnp.var(x, axis=(2, 3, 4), keepdims=True)            # biased
    xn = (x - mean) * lax.rsqrt(var + 1e-5)
    ref = lax.conv_general_dilated(
        xn, params["proj_w"], window_strides=(2, 2, 2), padding="VALID",
        dimension_numbers=("NCDHW", "OIDHW", "NCDHW"),
        precision=lax.Precision.HIGHEST,
    ) + params["proj_b"][None, :, None, None, None]
    err = float(jnp.max(jnp.abs(out - ref)))
    assert err < 1e-3, f"max abs err {err}"

    print("KERNEL_OK")
</pallas_src>

<mosaic_0001>
module attributes {stable_mosaic.version = 11 : i64} {
  func.func @_stats_kernel(%arg0: i32, %arg1: i32, %arg2: memref<1x16x4096xf32, #tpu.memory_space<vmem>>, %arg3: memref<1x16x2xf32, #tpu.memory_space<vmem>>, %arg4: memref<16x1xf32, #tpu.memory_space<vmem>>, %arg5: memref<16x1xf32, #tpu.memory_space<vmem>>) attributes {dimension_semantics = [#tpu.dimension_semantics<parallel>, #tpu.dimension_semantics<arbitrary>], iteration_bounds = array<i64: 2, 1>, scalar_prefetch = 0 : i64, scratch_operands = 2 : i64, tpu.core_type = #tpu.core_type<tc>, window_params = [{transform_indices = @transform_0, window_bounds = array<i64: 1, 16, 4096>}, {transform_indices = @transform_1, window_bounds = array<i64: 1, 16, 2>}]} {
    %c0_i32 = arith.constant 0 : i32
    %0 = arith.cmpi eq, %arg1, %c0_i32 : i32
    %1 = arith.extui %0 : i1 to i32
    %c0_i32_0 = arith.constant 0 : i32
    %2 = arith.cmpi ne, %1, %c0_i32_0 : i32
    scf.if %2 {
      %cst_14 = arith.constant 0.000000e+00 : f32
      %19 = vector.broadcast %cst_14 : f32 to vector<16x1xf32>
      %c0_15 = arith.constant 0 : index
      %c0_16 = arith.constant 0 : index
      %20 = vector.load %arg4[%c0_15, %c0_16] : memref<16x1xf32, #tpu.memory_space<vmem>>, vector<16x1xf32>
      tpu.vector_store %arg4[%c0_15, %c0_16], %19 {strides = array<i32>} : memref<16x1xf32, #tpu.memory_space<vmem>>, vector<16x1xf32>,
      %cst_17 = arith.constant 0.000000e+00 : f32
      %21 = vector.broadcast %cst_17 : f32 to vector<16x1xf32>
      %c0_18 = arith.constant 0 : index
      %c0_19 = arith.constant 0 : index
      %22 = vector.load %arg5[%c0_18, %c0_19] : memref<16x1xf32, #tpu.memory_space<vmem>>, vector<16x1xf32>
      tpu.vector_store %arg5[%c0_18, %c0_19], %21 {strides = array<i32>} : memref<16x1xf32, #tpu.memory_space<vmem>>, vector<16x1xf32>,
    } else {
    }
    %c0 = arith.constant 0 : index
    %c0_1 = arith.constant 0 : index
    %c0_2 = arith.constant 0 : index
    %3 = vector.load %arg2[%c0, %c0_1, %c0_2] : memref<1x16x4096xf32, #tpu.memory_space<vmem>>, vector<1x16x4096xf32>
    %4 = vector.shape_cast %3 : vector<1x16x4096xf32> to vector<16x4096xf32>
    %c0_3 = arith.constant 0 : index
    %c0_4 = arith.constant 0 : index
    %5 = vector.load %arg4[%c0_3, %c0_4] : memref<16x1xf32, #tpu.memory_space<vmem>>, vector<16x1xf32>
    %cst = arith.constant dense<0.000000e+00> : vector<16xf32>
    %6 = vector.multi_reduction <add>, %4, %cst [1] : vector<16x4096xf32> to vector<16xf32>
    %7 = vector.shape_cast %6 : vector<16xf32> to vector<16x1xf32>
    %8 = arith.addf %5, %7 : vector<16x1xf32>
    %c0_5 = arith.constant 0 : index
    %c0_6 = arith.constant 0 : index
    %9 = vector.load %arg4[%c0_5, %c0_6] : memref<16x1xf32, #tpu.memory_space<vmem>>, vector<16x1xf32>
    tpu.vector_store %arg4[%c0_5, %c0_6], %8 {strides = array<i32>} : memref<16x1xf32, #tpu.memory_space<vmem>>, vector<16x1xf32>,
    %c0_7 = arith.constant 0 : index
    %c0_8 = arith.constant 0 : index
    %10 = vector.load %arg5[%c0_7, %c0_8] : memref<16x1xf32, #tpu.memory_space<vmem>>, vector<16x1xf32>
    %11 = arith.mulf %4, %4 : vector<16x4096xf32>
    %cst_9 = arith.constant dense<0.000000e+00> : vector<16xf32>
    %12 = vector.multi_reduction <add>, %11, %cst_9 [1] : vector<16x4096xf32> to vector<16xf32>
    %13 = vector.shape_cast %12 : vector<16xf32> to vector<16x1xf32>
    %14 = arith.addf %10, %13 : vector<16x1xf32>
    %c0_10 = arith.constant 0 : index
    %c0_11 = arith.constant 0 : index
    %15 = vector.load %arg5[%c0_10, %c0_11] : memref<16x1xf32, #tpu.memory_space<vmem>>, vector<16x1xf32>
    tpu.vector_store %arg5[%c0_10, %c0_11], %14 {strides = array<i32>} : memref<16x1xf32, #tpu.memory_space<vmem>>, vector<16x1xf32>,
    %c0_i32_12 = arith.constant 0 : i32
    %16 = arith.cmpi eq, %arg1, %c0_i32_12 : i32
    %17 = arith.extui %16 : i1 to i32
    %c0_i32_13 = arith.constant 0 : i32
    %18 = arith.cmpi ne, %17, %c0_i32_13 : i32
    scf.if %18 {
      %c0_14 = arith.constant 0 : index
      %c0_15 = arith.constant 0 : index
      %19 = vector.load %arg4[%c0_14, %c0_15] : memref<16x1xf32, #tpu.memory_space<vmem>>, vector<16x1xf32>
      %cst_16 = arith.constant 2.44140625E-4 : f32
      %20 = vector.broadcast %cst_16 : f32 to vector<16x1xf32>
      %21 = arith.mulf %19, %20 : vector<16x1xf32>
      %c0_17 = arith.constant 0 : index
      %c0_18 = arith.constant 0 : index
      %22 = vector.load %arg5[%c0_17, %c0_18] : memref<16x1xf32, #tpu.memory_space<vmem>>, vector<16x1xf32>
      %cst_19 = arith.constant 2.44140625E-4 : f32
      %23 = vector.broadcast %cst_19 : f32 to vector<16x1xf32>
      %24 = arith.mulf %22, %23 : vector<16x1xf32>
      %25 = arith.mulf %21, %21 : vector<16x1xf32>
      %26 = arith.subf %24, %25 : vector<16x1xf32>
      %cst_20 = arith.constant 0.000000e+00 : f32
      %27 = vector.broadcast %cst_20 : f32 to vector<16x1xf32>
      %28 = arith.maximumf %26, %27 : vector<16x1xf32>
      %cst_21 = arith.constant 9.99999974E-6 : f32
      %29 = vector.broadcast %cst_21 : f32 to vector<16x1xf32>
      %30 = arith.addf %28, %29 : vector<16x1xf32>
      %31 = math.rsqrt %30 : vector<16x1xf32>
      %c0_22 = arith.constant 0 : index
      %c0_23 = arith.constant 0 : index
      %c0_24 = arith.constant 0 : index
      %32 = vector.load %arg3[%c0_22, %c0_23, %c0_24] : memref<1x16x2xf32, #tpu.memory_space<vmem>>, vector<1x16x1xf32>
      %33 = vector.shape_cast %32 : vector<1x16x1xf32> to vector<16x1xf32>
      %34 = vector.shape_cast %21 : vector<16x1xf32> to vector<1x16x1xf32>
      tpu.vector_store %arg3[%c0_22, %c0_23, %c0_24], %34 {strides = array<i32>} : memref<1x16x2xf32, #tpu.memory_space<vmem>>, vector<1x16x1xf32>,
      %c0_25 = arith.constant 0 : index
      %c0_26 = arith.constant 0 : index
      %c1 = arith.constant 1 : index
      %35 = vector.load %arg3[%c0_25, %c0_26, %c1] : memref<1x16x2xf32, #tpu.memory_space<vmem>>, vector<1x16x1xf32>
      %36 = vector.shape_cast %35 : vector<1x16x1xf32> to vector<16x1xf32>
      %37 = vector.shape_cast %31 : vector<16x1xf32> to vector<1x16x1xf32>
      tpu.vector_store %arg3[%c0_25, %c0_26, %c1], %37 {strides = array<i32>} : memref<1x16x2xf32, #tpu.memory_space<vmem>>, vector<1x16x1xf32>,
    } else {
    }
    return
  }
  func.func @transform_0(%arg0: i32, %arg1: i32) -> (i32, i32, i32) {
    %c0_i32 = arith.constant 0 : i32
    %c0_i32_0 = arith.constant 0 : i32
    return %arg0, %c0_i32, %arg1 : i32, i32, i32
  }
  func.func @transform_1(%arg0: i32, %arg1: i32) -> (i32, i32, i32) {
    %c0_i32 = arith.constant 0 : i32
    %c0_i32_0 = arith.constant 0 : i32
    %c0_i32_1 = arith.constant 0 : i32
    return %arg0, %c0_i32, %c0_i32_0 : i32, i32, i32
  }
}

module attributes {stable_mosaic.version = 11 : i64} {
  func.func @_norm_conv_kernel(%arg0: i32, %arg1: i32, %arg2: memref<1x128x512xf32, #tpu.memory_space<vmem>>, %arg3: memref<1x32x128xf32, #tpu.memory_space<vmem>>, %arg4: memref<1x32x1xf32, #tpu.memory_space<vmem>>, %arg5: memref<1x32x512xf32, #tpu.memory_space<vmem>>) attributes {dimension_semantics = [#tpu.dimension_semantics<parallel>, #tpu.dimension_semantics<parallel>], iteration_bounds = array<i64: 2, 1>, scalar_prefetch = 0 : i64, scratch_operands = 0 : i64, tpu.core_type = #tpu.core_type<tc>, window_params = [{transform_indices = @transform_0, window_bounds = array<i64: 1, 128, 512>}, {transform_indices = @transform_1, window_bounds = array<i64: 1, 32, 128>}, {transform_indices = @transform_2, window_bounds = array<i64: 1, 32, 1>}, {transform_indices = @transform_3, window_bounds = array<i64: 1, 32, 512>}]} {
    %c0 = arith.constant 0 : index
    %c0_0 = arith.constant 0 : index
    %c0_1 = arith.constant 0 : index
    %0 = vector.load %arg3[%c0, %c0_0, %c0_1] : memref<1x32x128xf32, #tpu.memory_space<vmem>>, vector<1x32x128xf32>
    %1 = vector.shape_cast %0 : vector<1x32x128xf32> to vector<32x128xf32>
    %c0_2 = arith.constant 0 : index
    %c0_3 = arith.constant 0 : index
    %c0_4 = arith.constant 0 : index
    %2 = vector.load %arg2[%c0_2, %c0_3, %c0_4] : memref<1x128x512xf32, #tpu.memory_space<vmem>>, vector<1x128x512xf32>
    %3 = vector.shape_cast %2 : vector<1x128x512xf32> to vector<128x512xf32>
    %cst = arith.constant dense<0.000000e+00> : vector<32x512xf32>
    %4 = tpu.matmul %1, %3, %cst {dimension_numbers = #tpu.dot_dimension_numbers<[1], [0], [0], [1], [0, 0, 1, 1], [], []>} : vector<32x128xf32>, vector<128x512xf32>, vector<32x512xf32> -> vector<32x512xf32>
    %c0_5 = arith.constant 0 : index
    %c0_6 = arith.constant 0 : index
    %c0_7 = arith.constant 0 : index
    %5 = vector.load %arg4[%c0_5, %c0_6, %c0_7] : memref<1x32x1xf32, #tpu.memory_space<vmem>>, vector<1x32x1xf32>
    %6 = vector.shape_cast %5 : vector<1x32x1xf32> to vector<32x1xf32>
    %7 = vector.broadcast %6 : vector<32x1xf32> to vector<32x512xf32>
    %8 = arith.addf %4, %7 : vector<32x512xf32>
    %c0_8 = arith.constant 0 : index
    %c0_9 = arith.constant 0 : index
    %c0_10 = arith.constant 0 : index
    %9 = vector.load %arg5[%c0_8, %c0_9, %c0_10] : memref<1x32x512xf32, #tpu.memory_space<vmem>>, vector<1x32x512xf32>
    %10 = vector.shape_cast %9 : vector<1x32x512xf32> to vector<32x512xf32>
    %11 = vector.shape_cast %8 : vector<32x512xf32> to vector<1x32x512xf32>
    tpu.vector_store %arg5[%c0_8, %c0_9, %c0_10], %11 {strides = array<i32>} : memref<1x32x512xf32, #tpu.memory_space<vmem>>, vector<1x32x512xf32>,
    return
  }
  func.func @transform_0(%arg0: i32, %arg1: i32) -> (i32, i32, i32) {
    %c0_i32 = arith.constant 0 : i32
    %c0_i32_0 = arith.constant 0 : i32
    return %arg0, %c0_i32, %arg1 : i32, i32, i32
  }
  func.func @transform_1(%arg0: i32, %arg1: i32) -> (i32, i32, i32) {
    %c0_i32 = arith.constant 0 : i32
    %c0_i32_0 = arith.constant 0 : i32
    %c0_i32_1 = arith.constant 0 : i32
    return %arg0, %c0_i32, %c0_i32_0 : i32, i32, i32
  }
  func.func @transform_2(%arg0: i32, %arg1: i32) -> (i32, i32, i32) {
    %c0_i32 = arith.constant 0 : i32
    %c0_i32_0 = arith.constant 0 : i32
    %c0_i32_1 = arith.constant 0 : i32
    return %arg0, %c0_i32, %c0_i32_0 : i32, i32, i32
  }
  func.func @transform_3(%arg0: i32, %arg1: i32) -> (i32, i32, i32) {
    %c0_i32 = arith.constant 0 : i32
    %c0_i32_0 = arith.constant 0 : i32
    return %arg0, %c0_i32, %arg1 : i32, i32, i32
  }
}

</mosaic_0001>

<bundles_post_ra>
// kernel: norm_downsample.2
= control target key start
LH: loop header
LB: loop body
LE: loop exit
PB: predicated region body
PF: predicated region fallthrough
CT: control target
= control target key end

     0   :  { %s609_s6 = smov 0   ;;  %s611_s7 = smov 0   ;;  %s728_s0 = inlined_call_operand.vmem [shape: f32[2,16,4096], index: 0, kind: input, shape index: {}]   ;;  %s729_s1 = inlined_call_operand.vmem [shape: f32[2,16,2], index: 1, kind: output, shape index: {}]  }
   0x1   :  { %s613_s8 = smov 0  }
   0x2 LB: > { %s23_s9 = sadd.s32 1, %s591_s7  ;;  %p534_p0 = scmp.ge.s32.totalorder %s595_s8, 1  ;;  %s595_s8 = sphi %s613_s8, %s11_s8   ;;  %s591_s7 = sphi %s611_s7, %s731_s7   ;;  %s587_s6 = sphi %s609_s6, %s730_s6  }
   0x3   : > { %p25_p1 = scmp.ge.s32.totalorder %s23_s9, 2  ;;  %p106_p2 = scmp.lt.s32.totalorder %s595_s8, 3 }
   0x5   : > { %s733_s9 = smov (%p25_p1, %s23_s9), 0  ;;  %p107_p3 = pnand %p534_p0, %p106_p2 }
   0x6   : > { %p131_p4 = scmp.lt.s32.totalorder (!%p107_p3), %s587_s6, 1  ;;  %vm149_vm0 = vcmask (!%p107_p3), 7168   ;;  %v597_v0 = vmov (!%p107_p3), 0.0   ;;  %s598_s18 = smov (!%p107_p3), 1   ;;  %vm458_vm1 = vcmask (!%p107_p3), 15368  }
   0x7   : > { %110 = sbr.rel (%p107_p3) target bundleno = 379 (0x17b), region = 24  ;;  %150 = vst.msk [vmem:[#allocation2] sm:$0xff] (!%p107_p3), %vm149_vm0, %v597_v0  ;;  %151 = vst.msk [vmem:[#allocation2 + $0x8] sm:$0xff] (!%p107_p3), %vm149_vm0, %v597_v0 }
   0x8   : > { %152 = vst.msk [vmem:[#allocation3] sm:$0xff] (!%p107_p3), %vm149_vm0, %v597_v0  ;;  %153 = vst.msk [vmem:[#allocation3 + $0x8] sm:$0xff] (!%p107_p3), %vm149_vm0, %v597_v0 }
   0xe   : > { %s735_s6 = smov (!%p131_p4, %s587_s6), 1 }
   0xf   : > { %s541_s10 = sshll.u32 %s735_s6, 9  ;;  %s542_s14 = sshll.u32 %s735_s6, 4 }
  0x10   : > { %s637_s13 = scalar_lea.vmem %s728_s0, %s541_s10  ;;  %s709_s17 = scalar_lea.vmem %s729_s1, %s542_s14 }
  0x11   : > { %v154_v1 = vld [vmem:[%s637_s13] sm:$0xff]  ;;  %v155_v2 = vld [vmem:[%s637_s13 + $0x8] sm:$0xff]  ;;  %v156_v3 = vld [vmem:[%s637_s13 + $0x10] sm:$0xff] }
  0x12   : > { %v157_v4 = vld [vmem:[%s637_s13 + $0x18] sm:$0xff]  ;;  %v220_v5 = vadd.f32 %v155_v2, %v154_v1  ;;  %v293_v6 = vmul.f32 %v154_v1, %v154_v1  ;;  %v294_v7 = vmul.f32 %v155_v2, %v155_v2  ;;  %v295_v8 = vmul.f32 %v156_v3, %v156_v3  ;;  %v158_v9 = vld [vmem:[%s637_s13 + $0x20] sm:$0xff]  ;;  %v159_v13 = vld [vmem:[%s637_s13 + $0x28] sm:$0xff] }
  0x13   : > { %v296_v11 = vmul.f32 %v157_v4, %v157_v4  ;;  %v297_v15 = vmul.f32 %v158_v9, %v158_v9  ;;  %v160_v17 = vld [vmem:[%s637_s13 + $0x30] sm:$0xff]  ;;  %v298_v19 = vmul.f32 %v159_v13, %v159_v13  ;;  %v161_v21 = vld [vmem:[%s637_s13 + $0x38] sm:$0xff]  ;;  %v186_v25 = vld [vmem:[%s637_s13 + $0x100] sm:$0xff] }
  0x14   : > { %v221_v10 = vadd.f32 %v220_v5, %v156_v3  ;;  %v357_v12 = vadd.f32 %v294_v7, %v293_v6  ;;  %v299_v23 = vmul.f32 %v160_v17, %v160_v17  ;;  %v162_v26 = vld [vmem:[%s637_s13 + $0x40] sm:$0xff]  ;;  %v187_v28 = vld [vmem:[%s637_s13 + $0x108] sm:$0xff]  ;;  %v188_v29 = vld [vmem:[%s637_s13 + $0x110] sm:$0xff]  ;;  %v300_v30 = vmul.f32 %v161_v21, %v161_v21 }
  0x15   : > { %v253_v32 = vadd.f32 %v187_v28, %v186_v25  ;;  %v163_v33 = vld [vmem:[%s637_s13 + $0x48] sm:$0xff]  ;;  %v189_v35 = vld [vmem:[%s637_s13 + $0x118] sm:$0xff]  ;;  %v301_v36 = vmul.f32 %v162_v26, %v162_v26  ;;  %v164_v39 = vld [vmem:[%s637_s13 + $0x50] sm:$0xff]  ;;  %v325_v58 = vmul.f32 %v186_v25, %v186_v25  ;;  %v326_v59 = vmul.f32 %v187_v28, %v187_v28 }
  0x16   : > { %v222_v14 = vadd.f32 %v221_v10, %v157_v4  ;;  %v358_v16 = vadd.f32 %v357_v12, %v295_v8  ;;  %v190_v41 = vld [vmem:[%s637_s13 + $0x120] sm:$0xff]  ;;  %v165_v42 = vld [vmem:[%s637_s13 + $0x58] sm:$0xff]  ;;  %v302_v43 = vmul.f32 %v163_v33, %v163_v33  ;;  %v191_v47 = vld [vmem:[%s637_s13 + $0x128] sm:$0xff]  ;;  %v303_v48 = vmul.f32 %v164_v39, %v164_v39 }
  0x17   : > { %v254_v38 = vadd.f32 %v253_v32, %v188_v29  ;;  %v166_v51 = vld [vmem:[%s637_s13 + $0x60] sm:$0xff]  ;;  %v304_v53 = vmul.f32 %v165_v42, %v165_v42  ;;  %v192_v54 = vld [vmem:[%s637_s13 + $0x130] sm:$0xff]  ;;  %v167_v55 = vld [vmem:[%s637_s13 + $0x68] sm:$0xff]  ;;  %v327_v2 = vmul.f32 %v188_v29, %v188_v29  ;;  %v390_v10 = vadd.f32 %v326_v59, %v325_v58 }
  0x18   : > { %v223_v18 = vadd.f32 %v222_v14, %v158_v9  ;;  %v359_v20 = vadd.f32 %v358_v16, %v296_v11  ;;  %v193_v61 = vld [vmem:[%s637_s13 + $0x138] sm:$0xff]  ;;  %v168_v62 = vld [vmem:[%s637_s13 + $0x70] sm:$0xff]  ;;  %v305_v63 = vmul.f32 %v166_v51, %v166_v51  ;;  %v306_v4 = vmul.f32 %v167_v55, %v167_v55  ;;  %v194_v5 = vld [vmem:[%s637_s13 + $0x140] sm:$0xff] }
  0x19   : > { %v255_v45 = vadd.f32 %v254_v38, %v189_v35  ;;  %v169_v6 = vld [vmem:[%s637_s13 + $0x78] sm:$0xff]  ;;  %v328_v9 = vmul.f32 %v189_v35, %v189_v35  ;;  %v307_v12 = vmul.f32 %v168_v62, %v168_v62  ;;  %v170_v14 = vld [vmem:[%s637_s13 + $0x80] sm:$0xff]  ;;  %v330_v25 = vmul.f32 %v191_v47, %v191_v47 }
  0x1a   : > { %v224_v22 = vadd.f32 %v223_v18, %v159_v13  ;;  %v360_v24 = vadd.f32 %v359_v20, %v297_v15  ;;  %v195_v13 = vld [vmem:[%s637_s13 + $0x148] sm:$0xff]  ;;  %v391_v18 = vadd.f32 %v390_v10, %v327_v2  ;;  %v308_v20 = vmul.f32 %v169_v6, %v169_v6  ;;  %v197_v29 = vld [vmem:[%s637_s13 + $0x158] sm:$0xff] }
  0x1b   : > { %v256_v50 = vadd.f32 %v255_v45, %v190_v41  ;;  %v309_v28 = vmul.f32 %v170_v14, %v170_v14  ;;  %v173_v38 = vld [vmem:[%s637_s13 + $0x98] sm:$0xff]  ;;  %v199_v45 = vld [vmem:[%s637_s13 + $0x168] sm:$0xff] }
  0x1c   : > { %v225_v27 = vadd.f32 %v224_v22, %v160_v17  ;;  %v361_v31 = vadd.f32 %v360_v24, %v298_v19  ;;  %v329_v17 = vmul.f32 %v190_v41, %v190_v41  ;;  %v171_v22 = vld [vmem:[%s637_s13 + $0x88] sm:$0xff]  ;;  %v332_v41 = vmul.f32 %v193_v61, %v193_v61 }
  0x1d   : > { %v257_v57 = vadd.f32 %v256_v50, %v191_v47 }
  0x1e   : > { %v226_v34 = vadd.f32 %v225_v27, %v161_v21  ;;  %v362_v37 = vadd.f32 %v361_v31, %v299_v23  ;;  %v196_v21 = vld [vmem:[%s637_s13 + $0x150] sm:$0xff] }
  0x1f   : > { %v258_v1 = vadd.f32 %v257_v57, %v192_v54  ;;  %v334_v57 = vmul.f32 %v195_v13, %v195_v13 }
  0x20   : > { %v227_v40 = vadd.f32 %v226_v34, %v162_v26  ;;  %v363_v44 = vadd.f32 %v362_v37, %v300_v30  ;;  %v392_v26 = vadd.f32 %v391_v18, %v328_v9  ;;  %v172_v30 = vld [vmem:[%s637_s13 + $0x90] sm:$0xff]  ;;  %v198_v37 = vld [vmem:[%s637_s13 + $0x160] sm:$0xff]  ;;  %v336_v9 = vmul.f32 %v197_v29, %v197_v29 }
  0x21   : > { %v259_v8 = vadd.f32 %v258_v1, %v193_v61  ;;  %v201_v61 = vld [vmem:[%s637_s13 + $0x178] sm:$0xff]  ;;  %v335_v1 = vmul.f32 %v196_v21, %v196_v21 }
  0x22   : > { %v228_v46 = vadd.f32 %v227_v40, %v163_v33  ;;  %v364_v49 = vadd.f32 %v363_v44, %v301_v36  ;;  %v331_v33 = vmul.f32 %v192_v54, %v192_v54  ;;  %v393_v34 = vadd.f32 %v392_v26, %v329_v17  ;;  %v175_v54 = vld [vmem:[%s637_s13 + $0xa8] sm:$0xff] }
  0x23   : > { %v260_v16 = vadd.f32 %v259_v8, %v194_v5  ;;  %v310_v36 = vmul.f32 %v171_v22, %v171_v22  ;;  %v311_v44 = vmul.f32 %v172_v30, %v172_v30  ;;  %v337_v17 = vmul.f32 %v198_v37, %v198_v37 }
  0x24   : > { %v229_v52 = vadd.f32 %v228_v46, %v164_v39  ;;  %v365_v56 = vadd.f32 %v364_v49, %v302_v43  ;;  %v174_v46 = vld [vmem:[%s637_s13 + $0xa0] sm:$0xff]  ;;  %v333_v49 = vmul.f32 %v194_v5, %v194_v5 }
  0x25   : > { %v261_v24 = vadd.f32 %v260_v16, %v195_v13  ;;  %v202_v5 = vld [vmem:[%s637_s13 + $0x180] sm:$0xff]  ;;  %v203_v13 = vld [vmem:[%s637_s13 + $0x188] sm:$0xff] }
  0x26   : > { %v230_v60 = vadd.f32 %v229_v52, %v165_v42  ;;  %v366_v0 = vadd.f32 %v365_v56, %v303_v48  ;;  %v394_v42 = vadd.f32 %v393_v34, %v330_v25  ;;  %v312_v52 = vmul.f32 %v173_v38, %v173_v38 }
  0x27   : > { %v262_v32 = vadd.f32 %v261_v24, %v196_v21  ;;  %v204_v21 = vld [vmem:[%s637_s13 + $0x190] sm:$0xff]  ;;  %v338_v25 = vmul.f32 %v199_v45, %v199_v45 }
  0x28   : > { %v231_v3 = vadd.f32 %v230_v60, %v166_v51  ;;  %v367_v7 = vadd.f32 %v366_v0, %v304_v53  ;;  %v395_v50 = vadd.f32 %v394_v42, %v331_v33  ;;  %v200_v53 = vld [vmem:[%s637_s13 + $0x170] sm:$0xff]  ;;  %v313_v60 = vmul.f32 %v174_v46, %v174_v46 }
  0x29   : > { %v263_v40 = vadd.f32 %v262_v32, %v197_v29  ;;  %v205_v29 = vld [vmem:[%s637_s13 + $0x198] sm:$0xff]  ;;  %v339_v33 = vmul.f32 %v200_v53, %v200_v53 }
  0x2a   : > { %v232_v11 = vadd.f32 %v231_v3, %v167_v55  ;;  %v368_v15 = vadd.f32 %v367_v7, %v305_v63  ;;  %v396_v58 = vadd.f32 %v395_v50, %v332_v41  ;;  %v340_v41 = vmul.f32 %v201_v61, %v201_v61 }
  0x2b   : > { %v264_v48 = vadd.f32 %v263_v40, %v198_v37  ;;  %v206_v37 = vld [vmem:[%s637_s13 + $0x1a0] sm:$0xff] }
  0x2c   : > { %v233_v19 = vadd.f32 %v232_v11, %v168_v62  ;;  %v369_v23 = vadd.f32 %v368_v15, %v306_v4  ;;  %v176_v62 = vld [vmem:[%s637_s13 + $0xb0] sm:$0xff]  ;;  %v397_v2 = vadd.f32 %v396_v58, %v333_v49  ;;  %v314_v4 = vmul.f32 %v175_v54, %v175_v54 }
  0x2d   : > { %v265_v56 = vadd.f32 %v264_v48, %v199_v45  ;;  %v207_v45 = vld [vmem:[%s637_s13 + $0x1a8] sm:$0xff]  ;;  %v341_v49 = vmul.f32 %v202_v5, %v202_v5 }
  0x2e   : > { %v234_v27 = vadd.f32 %v233_v19, %v169_v6  ;;  %v370_v31 = vadd.f32 %v369_v23, %v307_v12  ;;  %v177_v6 = vld [vmem:[%s637_s13 + $0xb8] sm:$0xff]  ;;  %v398_v10 = vadd.f32 %v397_v2, %v334_v57  ;;  %v315_v12 = vmul.f32 %v176_v62, %v176_v62 }
  0x2f   : > { %v266_v0 = vadd.f32 %v265_v56, %v200_v53  ;;  %v208_v53 = vld [vmem:[%s637_s13 + $0x1b0] sm:$0xff]  ;;  %v342_v57 = vmul.f32 %v203_v13, %v203_v13 }
  0x30   : > { %v235_v35 = vadd.f32 %v234_v27, %v170_v14  ;;  %v371_v39 = vadd.f32 %v370_v31, %v308_v20  ;;  %v178_v14 = vld [vmem:[%s637_s13 + $0xc0] sm:$0xff]  ;;  %v399_v18 = vadd.f32 %v398_v10, %v335_v1  ;;  %v316_v20 = vmul.f32 %v177_v6, %v177_v6 }
  0x31   : > { %v267_v8 = vadd.f32 %v266_v0, %v201_v61  ;;  %v209_v61 = vld [vmem:[%s637_s13 + $0x1b8] sm:$0xff]  ;;  %v343_v1 = vmul.f32 %v204_v21, %v204_v21 }
  0x32   : > { %v236_v43 = vadd.f32 %v235_v35, %v171_v22  ;;  %v372_v47 = vadd.f32 %v371_v39, %v309_v28  ;;  %v179_v22 = vld [vmem:[%s637_s13 + $0xc8] sm:$0xff]  ;;  %v400_v26 = vadd.f32 %v399_v18, %v336_v9  ;;  %v317_v28 = vmul.f32 %v178_v14, %v178_v14 }
  0x33   : > { %v268_v16 = vadd.f32 %v267_v8, %v202_v5  ;;  %v210_v5 = vld [vmem:[%s637_s13 + $0x1c0] sm:$0xff]  ;;  %v344_v9 = vmul.f32 %v205_v29, %v205_v29 }
  0x34   : > { %v237_v51 = vadd.f32 %v236_v43, %v172_v30  ;;  %v373_v55 = vadd.f32 %v372_v47, %v310_v36  ;;  %v180_v30 = vld [vmem:[%s637_s13 + $0xd0] sm:$0xff]  ;;  %v401_v34 = vadd.f32 %v400_v26, %v337_v17  ;;  %v318_v36 = vmul.f32 %v179_v22, %v179_v22  ;;  %v213_v26 = vld [vmem:[%s637_s13 + $0x1d8] sm:$0xff] }
  0x35   : > { %v269_v24 = vadd.f32 %v268_v16, %v203_v13  ;;  %v211_v13 = vld [vmem:[%s637_s13 + $0x1c8] sm:$0xff]  ;;  %v345_v16 = vmul.f32 %v206_v37, %v206_v37 }
  0x36   : > { %v238_v59 = vadd.f32 %v237_v51, %v173_v38  ;;  %v374_v63 = vadd.f32 %v373_v55, %v311_v44  ;;  %v181_v38 = vld [vmem:[%s637_s13 + $0xd8] sm:$0xff]  ;;  %v402_v42 = vadd.f32 %v401_v34, %v338_v25  ;;  %v319_v44 = vmul.f32 %v180_v30, %v180_v30 }
  0x37   : > { %v270_v32 = vadd.f32 %v269_v24, %v204_v21  ;;  %v348_v34 = vmul.f32 %v209_v61, %v209_v61 }
  0x38   : > { %v239_v3 = vadd.f32 %v238_v59, %v174_v46  ;;  %v375_v7 = vadd.f32 %v374_v63, %v312_v52  ;;  %v182_v46 = vld [vmem:[%s637_s13 + $0xe0] sm:$0xff]  ;;  %v403_v50 = vadd.f32 %v402_v42, %v339_v33  ;;  %v320_v52 = vmul.f32 %v181_v38, %v181_v38 }
  0x39   : > { %v271_v40 = vadd.f32 %v270_v32, %v205_v29  ;;  %v347_v29 = vmul.f32 %v208_v53, %v208_v53  ;;  %v350_v42 = vmul.f32 %v211_v13, %v211_v13 }
  0x3a   : > { %v240_v11 = vadd.f32 %v239_v3, %v175_v54  ;;  %v376_v15 = vadd.f32 %v375_v7, %v313_v60  ;;  %v183_v54 = vld [vmem:[%s637_s13 + $0xe8] sm:$0xff]  ;;  %v404_v58 = vadd.f32 %v403_v50, %v340_v41  ;;  %v321_v60 = vmul.f32 %v182_v46, %v182_v46 }
  0x3b   : > { %v272_v48 = vadd.f32 %v271_v40, %v206_v37  ;;  %v216_v40 = vld [vmem:[%s637_s13 + $0x1f0] sm:$0xff] }
  0x3c   : > { %v241_v19 = vadd.f32 %v240_v11, %v176_v62  ;;  %v377_v23 = vadd.f32 %v376_v15, %v314_v4  ;;  %v184_v62 = vld [vmem:[%s637_s13 + $0xf0] sm:$0xff]  ;;  %v405_v2 = vadd.f32 %v404_v58, %v341_v49  ;;  %v322_v4 = vmul.f32 %v183_v54, %v183_v54 }
  0x3d   : > { %v273_v56 = vadd.f32 %v272_v48, %v207_v45  ;;  %v352_v49 = vmul.f32 %v213_v26, %v213_v26 }
  0x3e   : > { %v242_v27 = vadd.f32 %v241_v19, %v177_v6  ;;  %v378_v31 = vadd.f32 %v377_v23, %v315_v12  ;;  %v185_v6 = vld [vmem:[%s637_s13 + $0xf8] sm:$0xff]  ;;  %v406_v10 = vadd.f32 %v405_v2, %v342_v57  ;;  %v323_v12 = vmul.f32 %v184_v62, %v184_v62 }
  0x3f   : > { %v274_v0 = vadd.f32 %v273_v56, %v208_v53  ;;  %v324_v19 = vmul.f32 %v185_v6, %v185_v6  ;;  %v346_v23 = vmul.f32 %v207_v45, %v207_v45 }
  0x40   : > { %v243_v35 = vadd.f32 %v242_v27, %v178_v14  ;;  %v379_v39 = vadd.f32 %v378_v31, %v316_v20  ;;  %v407_v17 = vadd.f32 %v406_v10, %v343_v1  ;;  %v212_v20 = vld [vmem:[%s637_s13 + $0x1d0] sm:$0xff]  ;;  %v214_v31 = vld [vmem:[%s637_s13 + $0x1e0] sm:$0xff] }
  0x41   : > { %v275_v8 = vadd.f32 %v274_v0, %v209_v61  ;;  %v218_v61 = vld [vmem:[#allocation2] sm:$0xff]  ;;  %v291_v0 = vld [vmem:[#allocation3] sm:$0xff] }
  0x42   : > { %v244_v43 = vadd.f32 %v243_v35, %v179_v22  ;;  %v380_v47 = vadd.f32 %v379_v39, %v317_v28  ;;  %v408_v24 = vadd.f32 %v407_v17, %v344_v9 }
  0x43   : > { %v276_v15 = vadd.f32 %v275_v8, %v210_v5 }
  0x44   : > { %v245_v51 = vadd.f32 %v244_v43, %v180_v30  ;;  %v381_v55 = vadd.f32 %v380_v47, %v318_v36  ;;  %v409_v30 = vadd.f32 %v408_v24, %v345_v16  ;;  %v215_v36 = vld [vmem:[%s637_s13 + $0x1e8] sm:$0xff] }
  0x45   : > { %v277_v22 = vadd.f32 %v276_v15, %v211_v13  ;;  %v354_v53 = vmul.f32 %v215_v36, %v215_v36 }
  0x46   : > { %v246_v59 = vadd.f32 %v245_v51, %v181_v38  ;;  %v382_v63 = vadd.f32 %v381_v55, %v319_v44  ;;  %v410_v35 = vadd.f32 %v409_v30, %v346_v23  ;;  %v349_v38 = vmul.f32 %v210_v5, %v210_v5  ;;  %v217_v44 = vld [vmem:[%s637_s13 + $0x1f8] sm:$0xff] }
  0x47   : > { %v278_v28 = vadd.f32 %v277_v22, %v212_v20  ;;  %v353_v51 = vmul.f32 %v214_v31, %v214_v31  ;;  %v355_v55 = vmul.f32 %v216_v40, %v216_v40  ;;  %v356_v57 = vmul.f32 %v217_v44, %v217_v44 }
  0x48   : > { %v247_v3 = vadd.f32 %v246_v59, %v182_v46  ;;  %v383_v7 = vadd.f32 %v382_v63, %v320_v52  ;;  %v411_v39 = vadd.f32 %v410_v35, %v347_v29  ;;  %v351_v46 = vmul.f32 %v212_v20, %v212_v20 }
  0x49   : > { %v279_v33 = vadd.f32 %v278_v28, %v213_v26 }
  0x4a   : > { %v248_v11 = vadd.f32 %v247_v3, %v183_v54  ;;  %v384_v14 = vadd.f32 %v383_v7, %v321_v60  ;;  %v412_v43 = vadd.f32 %v411_v39, %v348_v34  ;;  %v219_v3 = vld [vmem:[#allocation2 + $0x8] sm:$0xff] }
  0x4b   : > { %v280_v37 = vadd.f32 %v279_v33, %v214_v31 }
  0x4c   : > { %v249_v18 = vadd.f32 %v248_v11, %v184_v62  ;;  %v385_v21 = vadd.f32 %v384_v14, %v322_v4  ;;  %v413_v47 = vadd.f32 %v412_v43, %v349_v38  ;;  %v292_v14 = vld [vmem:[#allocation3 + $0x8] sm:$0xff] }
  0x4d   : > { %v281_v41 = vadd.f32 %v280_v37, %v215_v36 }
  0x4e   : > { %v250_v25 = vadd.f32 %v249_v18, %v185_v6  ;;  %v386_v27 = vadd.f32 %v385_v21, %v323_v12  ;;  %v414_v50 = vadd.f32 %v413_v47, %v350_v42 }
  0x4f   : > { %v282_v45 = vadd.f32 %v281_v41, %v216_v40 }
  0x50   : > { %251 = vadd.xlane.f32.xlu0 %v250_v25  ;;  %v387_v32 = vadd.f32 %v386_v27, %v324_v19  ;;  %v415_v52 = vadd.f32 %v414_v50, %v351_v46 }
  0x51   : > { %v283_v48 = vadd.f32 %v282_v45, %v217_v44 }
  0x52   : > { %388 = vadd.xlane.f32.xlu1 %v387_v32  ;;  %v416_v54 = vadd.f32 %v415_v52, %v352_v49 }
  0x54   : > { %284 = vadd.xlane.f32.xlu0 %v283_v48  ;;  %v417_v56 = vadd.f32 %v416_v54, %v353_v51 }
  0x56   : > { %v418_v58 = vadd.f32 %v417_v56, %v354_v53 }
  0x58   : > { %v419_v59 = vadd.f32 %v418_v58, %v355_v55 }
  0x5a   : > { %v420_v60 = vadd.f32 %v419_v59, %v356_v57 }
  0x5c   : > { %421 = vadd.xlane.f32.xlu1 %v420_v60 }
  0xdd   : > { %v252_v62 = vpop.xlane.xlu0 %251 }
  0xde   : > { %v286_v63 = vadd.f32 %v252_v62, %v218_v61 }
  0xdf   : > { %v389_v1 = vpop.xlane.xlu1 %388 }
  0xe0   : > { %289 = vst.msk [vmem:[#allocation2] sm:$0xff] %vm149_vm0, %v286_v63  ;;  %v423_v2 = vadd.f32 %v389_v1, %v291_v0 }
  0xe1   : > { %v285_v5 = vpop.xlane.xlu0 %284 }
  0xe2   : > { %425 = vst.msk [vmem:[#allocation3] sm:$0xff] %vm149_vm0, %v423_v2  ;;  %v287_v7 = vadd.f32 %v285_v5, %v219_v3 }
  0xe4   : > { %290 = vst.msk [vmem:[#allocation2 + $0x8] sm:$0xff] %vm149_vm0, %v287_v7 }
  0xe7   : > { %v430_v4 = vld [vmem:[#allocation2] sm:$0xff] }
  0xe8   : > { %v432_v6 = vmul.f32 0.00024414063, %v430_v4 }
  0xe9   : > { %v434_v8 = vld [vmem:[#allocation3] sm:$0xff]  ;;  %v422_v17 = vpop.xlane.xlu1 %421 }
  0xea   : > { %v438_v9 = vmul.f32 %v432_v6, %v432_v6  ;;  %448 = vst.msk [vmem:[%s709_s17] sm:$0xff] %vm149_vm0, %v432_v6  ;;  %v436_v10 = vmul.f32 0.00024414063, %v434_v8  ;;  %v424_v18 = vadd.f32 %v422_v17, %v292_v14 }
  0xeb   : > { %v431_v15 = vld [vmem:[#allocation2 + $0x8] sm:$0xff] }
  0xec   : > { %v440_v11 = vsub.f32 %v436_v10, %v438_v9  ;;  %v433_v16 = vmul.f32 0.00024414063, %v431_v15  ;;  %426 = vst.msk [vmem:[#allocation3 + $0x8] sm:$0xff] %vm149_vm0, %v424_v18 }
  0xee   : > { %v442_v12 = vmax.f32 %v440_v11, 0.0  ;;  %449 = vst.msk [vmem:[%s709_s17 + $0x8] sm:$0xff] %vm149_vm0, %v433_v16  ;;  %v439_v20 = vmul.f32 %v433_v16, %v433_v16 }
  0xf0   : > { %v444_v13 = vadd.f32 1e-05, %v442_v12 }
  0xf2   : > { %569 = vrsqrt.f32 %v444_v13 }
  0xf3   : > { %v435_v21 = vld [vmem:[#allocation3 + $0x8] sm:$0xff] }
  0xf4   : > { %v437_v22 = vmul.f32 0.00024414063, %v435_v21 }
  0xf6   : > { %v441_v23 = vsub.f32 %v437_v22, %v439_v20 }
  0xf8   : > { %v443_v24 = vmax.f32 %v441_v23, 0.0 }
  0xfa   : > { %v445_v25 = vadd.f32 1e-05, %v443_v24 }
  0xfc   : > { %v570_v19 = vpop.eup %569  ;;  %571 = vrsqrt.f32 %v445_v25 }
  0xfd   : > { %452 = vrot.lane.b32.xlu0 %v570_v19, %s598_s18 }
 0x106   : > { %v572_v26 = vpop.eup %571 }
 0x107   : > { %454 = vrot.lane.b32.xlu1 %v572_v26, %s598_s18 }
 0x16f   : > { %v453_v27 = vpop.permute.xlu0 %452 }
 0x170   : > { %459 = vst.msk [vmem:[%s709_s17] sm:$0xff] %vm458_vm1, %v453_v27 }
 0x179   : > { %v455_v28 = vpop.permute.xlu1 %454 }
 0x17a   : > { %460 = vst.msk [vmem:[%s709_s17 + $0x8] sm:$0xff] %vm458_vm1, %v455_v28 }
 0x17b PF: > { %s11_s8 = sadd.s32 1, %s595_s8   ;;  %s730_s6 = smov %s591_s7 }
 0x17c   : > { %p8_p5 = scmp.ge.s32.totalorder %s11_s8, 4   ;;  %s731_s7 = smov %s733_s9 }
 0x17e   :  { %10 = sbr.rel (!%p8_p5) target bundleno = 2 (0x2), region = 62 }

// kernel: mul.19
= control target key start
LH: loop header
LB: loop body
LE: loop exit
PB: predicated region body
PF: predicated region fallthrough
CT: control target
= control target key end

     0   :  { %s7_s6 = smov 3  ;;  %s21_s9 = smov 3  ;;  %vm4_vm0 = vcmask 64512   ;;  %vm11_vm1 = vcmask 1048512   ;;  %vm18_vm2 = vcmask 982912   ;;  %vm25_vm3 = vcmask 917312   ;;  %s223_s0 = inlined_call_operand.vmem [shape: f32[2,16,8], index: 0, kind: input, shape index: {}]   ;;  %s224_s1 = inlined_call_operand.vmem [shape: f32[2,128], index: 1, kind: output, shape index: {}]  }
   0x1   :  { %v117_v0 = vld [vmem:[%s223_s0 + $0xf] ss:$16 sm:%s7_s6]   ;;  %s147_s10 = smov 120   ;;  %v119_v1 = vld [vmem:[%s223_s0 + $0xd] ss:$16 sm:%s21_s9]   ;;  %s14_s13 = smov 3 }
   0x2   :  { %9 = vrot.lane.b32.xlu0 %v117_v0, %s147_s10  ;;  %s148_s14 = smov 104   ;;  %v118_v2 = vld [vmem:[%s223_s0 + $0xe] ss:$16 sm:%s14_s13]   ;;  %s28_s17 = smov 3  ;;  %vm32_vm4 = vcmask 851712   ;;  %vm39_vm5 = vcmask 786112  }
   0x3   :  { %23 = vrot.lane.b32.xlu1 %v119_v1, %s148_s14  ;;  %v120_v3 = vld [vmem:[%s223_s0 + $0xc] ss:$16 sm:%s28_s17]   ;;  %s35_s20 = smov 3  ;;  %s42_s21 = smov 3  ;;  %vm46_vm6 = vcmask 720512   ;;  %vm53_vm7 = vcmask 654912  }
   0x4   :  { %s149_s22 = smov 112   ;;  %s150_s23 = smov 96   ;;  %v121_v4 = vld [vmem:[%s223_s0 + $0xb] ss:$16 sm:%s35_s20]   ;;  %v122_v5 = vld [vmem:[%s223_s0 + $0xa] ss:$16 sm:%s42_s21]  }
   0x5   :  { %s49_s28 = smov 3  ;;  %s56_s29 = smov 3  ;;  %vm60_vm8 = vcmask 589312   ;;  %vm67_vm9 = vcmask 523712   ;;  %vm74_vm10 = vcmask 458112   ;;  %vm81_vm11 = vcmask 392512  }
   0x6   :  { %16 = vrot.lane.b32.xlu0 %v118_v2, %s149_s22  ;;  %s151_s30 = smov 88   ;;  %s152_s2 = smov 80   ;;  %v123_v6 = vld [vmem:[%s223_s0 + $0x9] ss:$16 sm:%s49_s28]   ;;  %vm88_vm12 = vcmask 326912   ;;  %vm95_vm13 = vcmask 261312  }
   0x7   :  { %30 = vrot.lane.b32.xlu1 %v120_v3, %s150_s23  ;;  %v124_v7 = vld [vmem:[%s223_s0 + $0x8] ss:$16 sm:%s56_s29]   ;;  %s63_s7 = smov 3  ;;  %s70_s8 = smov 3  ;;  %vm102_vm14 = vcmask 195712   ;;  %vm109_vm15 = vcmask 130112  }
   0x8   :  { %s153_s9 = smov 72   ;;  %s154_s10 = smov 64   ;;  %v125_v8 = vld [vmem:[%s223_s0 + $0x7] ss:$16 sm:%s63_s7]   ;;  %v126_v9 = vld [vmem:[%s223_s0 + $0x6] ss:$16 sm:%s70_s8]  }
   0x9   :  { %s2_s13 = smov 3  ;;  %s77_s16 = smov 3 }
   0xa   :  { %37 = vrot.lane.b32.xlu0 %v121_v4, %s151_s30  ;;  %v3_v10 = vld [vmem:[%s223_s0] ss:$16 sm:%s2_s13]   ;;  %s84_s19 = smov 3  ;;  %s155_s20 = smov 56  }
   0xb   :  { %44 = vrot.lane.b32.xlu1 %v122_v5, %s152_s2  ;;  %5 = vst.msk [vmem:[#allocation0] sm:$0x3] %vm4_vm0, %v3_v10   ;;  %s156_s21 = smov 48   ;;  %v127_v11 = vld [vmem:[%s223_s0 + $0x5] ss:$16 sm:%s77_s16]   ;;  %s91_s26 = smov 3 }
   0xc   :  { %v128_v12 = vld [vmem:[%s223_s0 + $0x4] ss:$16 sm:%s84_s19]   ;;  %s98_s27 = smov 3  ;;  %s157_s28 = smov 40   ;;  %v129_v13 = vld [vmem:[%s223_s0 + $0x3] ss:$16 sm:%s91_s26]  }
   0xd   :  { %s158_s29 = smov 32   ;;  %v130_v14 = vld [vmem:[%s223_s0 + $0x2] ss:$16 sm:%s98_s27]   ;;  %s105_s5 = smov 3 }
   0xe   :  { %51 = vrot.lane.b32.xlu0 %v123_v6, %s153_s9  ;;  %s159_s6 = smov 24   ;;  %s160_s7 = smov 16   ;;  %v131_v15 = vld [vmem:[%s223_s0 + $0x1] ss:$16 sm:%s105_s5]  }
   0xf   :  { %58 = vrot.lane.b32.xlu1 %v124_v7, %s154_s10  ;;  %s161_s0 = smov 8  }
  0x12   :  { %65 = vrot.lane.b32.xlu0 %v125_v8, %s155_s20 }
  0x13   :  { %72 = vrot.lane.b32.xlu1 %v126_v9, %s156_s21 }
  0x16   :  { %79 = vrot.lane.b32.xlu0 %v127_v11, %s157_s28 }
  0x17   :  { %86 = vrot.lane.b32.xlu1 %v128_v12, %s158_s29 }
  0x1a   :  { %93 = vrot.lane.b32.xlu0 %v129_v13, %s159_s6 }
  0x1b   :  { %100 = vrot.lane.b32.xlu1 %v130_v14, %s160_s7 }
  0x1e   :  { %107 = vrot.lane.b32.xlu0 %v131_v15, %s161_s0 }
  0x74   :  { %v10_v16 = vpop.permute.xlu0 %9  }
  0x75   :  { %12 = vst.msk [vmem:[#allocation0] sm:$0x3] %vm11_vm1, %v10_v16   ;;  %v24_v17 = vpop.permute.xlu1 %23  }
  0x78   :  { %v17_v18 = vpop.permute.xlu0 %16  }
  0x79   :  { %19 = vst.msk [vmem:[#allocation0] sm:$0x3] %vm18_vm2, %v17_v18   ;;  %v31_v19 = vpop.permute.xlu1 %30  }
  0x7a   :  { %26 = vst.msk [vmem:[#allocation0] sm:$0x3] %vm25_vm3, %v24_v17  }
  0x7b   :  { %33 = vst.msk [vmem:[#allocation0] sm:$0x3] %vm32_vm4, %v31_v19  }
  0x7c   :  { %v38_v20 = vpop.permute.xlu0 %37  }
  0x7d   :  { %40 = vst.msk [vmem:[#allocation0] sm:$0x3] %vm39_vm5, %v38_v20   ;;  %v45_v21 = vpop.permute.xlu1 %44  }
  0x7e   :  { %47 = vst.msk [vmem:[#allocation0] sm:$0x3] %vm46_vm6, %v45_v21  }
  0x80   :  { %v52_v22 = vpop.permute.xlu0 %51  }
  0x81   :  { %54 = vst.msk [vmem:[#allocation0] sm:$0x3] %vm53_vm7, %v52_v22   ;;  %v59_v23 = vpop.permute.xlu1 %58  }
  0x82   :  { %61 = vst.msk [vmem:[#allocation0] sm:$0x3] %vm60_vm8, %v59_v23  }
  0x84   :  { %v66_v24 = vpop.permute.xlu0 %65  }
  0x85   :  { %68 = vst.msk [vmem:[#allocation0] sm:$0x3] %vm67_vm9, %v66_v24   ;;  %v73_v25 = vpop.permute.xlu1 %72  }
  0x86   :  { %75 = vst.msk [vmem:[#allocation0] sm:$0x3] %vm74_vm10, %v73_v25  }
  0x88   :  { %v80_v26 = vpop.permute.xlu0 %79  }
  0x89   :  { %82 = vst.msk [vmem:[#allocation0] sm:$0x3] %vm81_vm11, %v80_v26   ;;  %v87_v27 = vpop.permute.xlu1 %86  }
  0x8a   :  { %89 = vst.msk [vmem:[#allocation0] sm:$0x3] %vm88_vm12, %v87_v27  }
  0x8c   :  { %v94_v28 = vpop.permute.xlu0 %93  }
  0x8d   :  { %96 = vst.msk [vmem:[#allocation0] sm:$0x3] %vm95_vm13, %v94_v28   ;;  %v101_v29 = vpop.permute.xlu1 %100  }
  0x8e   :  { %103 = vst.msk [vmem:[#allocation0] sm:$0x3] %vm102_vm14, %v101_v29  }
  0x90   :  { %v108_v30 = vpop.permute.xlu0 %107  }
  0x91   :  { %110 = vst.msk [vmem:[#allocation0] sm:$0x3] %vm109_vm15, %v108_v30  }
  0x98   :  { %v114_v31 = vld [vmem:[#allocation0] sm:$0x3] }
  0x99   :  { %116 = vst [vmem:[%s224_s1] sm:$0x3] %v114_v31 }

// kernel: norm_downsample.3
= control target key start
LH: loop header
LB: loop body
LE: loop exit
PB: predicated region body
PF: predicated region fallthrough
CT: control target
= control target key end

     0   :  { %s804_s12 = smov 0   ;;  %s806_s13 = smov 0   ;;  %s950_s0 = inlined_call_operand.vmem [shape: f32[2,128,512], index: 0, kind: input, shape index: {}]   ;;  %s951_s1 = inlined_call_operand.vmem [shape: f32[2,32,128], index: 1, kind: input, shape index: {}]   ;;  %s952_s2 = inlined_call_operand.vmem [shape: f32[2,32,1], index: 2, kind: input, shape index: {}]   ;;  %s953_s3 = inlined_call_operand.vmem [shape: f32[2,32,512], index: 3, kind: output, shape index: {}]  }
   0x1   :  { %s808_s14 = smov 0  }
   0x2 LB: > { %s25_s15 = sadd.s32 1, %s776_s13  ;;  %p651_p0 = scmp.ge.s32.totalorder %s780_s14, 1  ;;  %s780_s14 = sphi %s808_s14, %s13_s14   ;;  %s776_s13 = sphi %s806_s13, %s955_s13   ;;  %s772_s12 = sphi %s804_s12, %s954_s12  }
   0x3   : > { %p27_p1 = scmp.ge.s32.totalorder %s25_s15, 2  ;;  %p178_p2 = scmp.lt.s32.totalorder %s780_s14, 3 }
   0x5   : > { %s957_s15 = smov (%p27_p1, %s25_s15), 0  ;;  %p179_p3 = pnand %p651_p0, %p178_p2 }
   0x6   : > { %p221_p4 = scmp.lt.s32.totalorder (!%p179_p3), %s772_s12, 1  ;;  %v782_v0 = vmov (!%p179_p3), 0.0   ;;  %v783_v1 = vmov (!%p179_p3), 0  }
   0x7   : > { %182 = sbr.rel (%p179_p3) target bundleno = 282 (0x11a), region = 32  ;;  %406 = vmatprep.mubr.f32.mxu0 (!%p179_p3), %v782_v0  ;;  %495 = vmatprep.mubr.f32.mxu1 (!%p179_p3), %v782_v0 }
   0x8   : > { %756 = vset.pattern.permute.xlu0 (!%p179_p3), %v783_v1  ;;  %757 = vset.pattern.permute.xlu1 (!%p179_p3), %v783_v1 }
   0xe   : > { %s959_s12 = smov (!%p221_p4, %s772_s12), 1 }
   0xf   : > { %s662_s16 = sshll.u32 %s959_s12, 9  ;;  %s663_s20 = sshll.u32 %s959_s12, 5 }
  0x10   : > { %s830_s19 = scalar_lea.vmem %s950_s0, %s662_s16  ;;  %s890_s23 = scalar_lea.vmem %s952_s2, %s663_s20 }
  0x11   : > { %v255_v2 = vld [vmem:[%s830_s19 + $0x8] sm:$0xff]  ;;  %v257_v4 = vld [vmem:[%s830_s19 + $0x18] sm:$0xff]  ;;  %v254_v7 = vld [vmem:[%s830_s19] sm:$0xff]  ;;  %s234_s26 = scalar_lea.vmem %s951_s1, %s663_s20  ;;  %s665_s27 = sshll.u32 %s959_s12, 7 }
  0x12   : > { %v259_v3 = vld [vmem:[%s830_s19 + $0x28] sm:$0xff]  ;;  %v261_v6 = vld [vmem:[%s830_s19 + $0x38] sm:$0xff]  ;;  %v258_v8 = vld [vmem:[%s830_s19 + $0x20] sm:$0xff]  ;;  %s923_s30 = scalar_lea.vmem %s953_s3, %s665_s27 }
  0x13   : > { %v666_v5 = vpack.c.bf16 %v259_v3, %v255_v2  ;;  %v698_v9 = vpack.c.bf16 %v261_v6, %v257_v4  ;;  %v668_v10 = vpack.c.bf16 %v258_v8, %v254_v7  ;;  %v256_v11 = vld [vmem:[%s830_s19 + $0x10] sm:$0xff]  ;;  %v263_v13 = vld [vmem:[%s830_s19 + $0x48] sm:$0xff]  ;;  %v265_v16 = vld [vmem:[%s830_s19 + $0x58] sm:$0xff] }
  0x14   : > { %v260_v12 = vld [vmem:[%s830_s19 + $0x30] sm:$0xff]  ;;  %v267_v15 = vld [vmem:[%s830_s19 + $0x68] sm:$0xff]  ;;  %v269_v17 = vld [vmem:[%s830_s19 + $0x78] sm:$0xff] }
  0x15   : > { %667 = vmatprep.subr.bf16.mxu0 %v666_v5  ;;  %v700_v14 = vpack.c.bf16 %v260_v12, %v256_v11  ;;  %699 = vmatprep.subr.bf16.mxu1 %v698_v9  ;;  %v670_v18 = vpack.c.bf16 %v267_v15, %v263_v13  ;;  %v702_v19 = vpack.c.bf16 %v269_v17, %v265_v16  ;;  %v262_v20 = vld [vmem:[%s830_s19 + $0x40] sm:$0xff]  ;;  %v264_v22 = vld [vmem:[%s830_s19 + $0x50] sm:$0xff]  ;;  %v271_v25 = vld [vmem:[%s830_s19 + $0x88] sm:$0xff] }
  0x16   : > { %669 = vmatpush1.bf16.msra.mxu0 %v668_v10  ;;  %v266_v21 = vld [vmem:[%s830_s19 + $0x60] sm:$0xff]  ;;  %v268_v24 = vld [vmem:[%s830_s19 + $0x70] sm:$0xff]  ;;  %v275_v26 = vld [vmem:[%s830_s19 + $0xa8] sm:$0xff] }
  0x17   : > { %701 = vmatpush1.bf16.msra.mxu1 %v700_v14  ;;  %v672_v23 = vpack.c.bf16 %v266_v21, %v262_v20  ;;  %671 = vmatprep.subr.bf16.mxu0 %v670_v18  ;;  %v704_v27 = vpack.c.bf16 %v268_v24, %v264_v22  ;;  %v674_v28 = vpack.c.bf16 %v275_v26, %v271_v25  ;;  %v273_v29 = vld [vmem:[%s830_s19 + $0x98] sm:$0xff]  ;;  %v270_v31 = vld [vmem:[%s830_s19 + $0x80] sm:$0xff]  ;;  %v272_v34 = vld [vmem:[%s830_s19 + $0x90] sm:$0xff] }
  0x18   : > { %703 = vmatprep.subr.bf16.mxu1 %v702_v19  ;;  %v277_v30 = vld [vmem:[%s830_s19 + $0xb8] sm:$0xff]  ;;  %v274_v33 = vld [vmem:[%s830_s19 + $0xa0] sm:$0xff]  ;;  %v276_v35 = vld [vmem:[%s830_s19 + $0xb0] sm:$0xff] }
  0x19   : > { %v706_v32 = vpack.c.bf16 %v277_v30, %v273_v29  ;;  %v676_v36 = vpack.c.bf16 %v274_v33, %v270_v31  ;;  %v279_v37 = vld [vmem:[%s830_s19 + $0xc8] sm:$0xff]  ;;  %v281_v39 = vld [vmem:[%s830_s19 + $0xd8] sm:$0xff]  ;;  %v708_v40 = vpack.c.bf16 %v276_v35, %v272_v34  ;;  %v278_v43 = vld [vmem:[%s830_s19 + $0xc0] sm:$0xff] }
  0x1a   : > { %673 = vmatpush1.bf16.msra.mxu0 %v672_v23  ;;  %v283_v38 = vld [vmem:[%s830_s19 + $0xe8] sm:$0xff]  ;;  %v285_v42 = vld [vmem:[%s830_s19 + $0xf8] sm:$0xff]  ;;  %v282_v44 = vld [vmem:[%s830_s19 + $0xe0] sm:$0xff] }
  0x1b   : > { %705 = vmatpush1.bf16.msra.mxu1 %v704_v27  ;;  %675 = vmatprep.subr.bf16.mxu0 %v674_v28  ;;  %v678_v41 = vpack.c.bf16 %v283_v38, %v279_v37  ;;  %v710_v45 = vpack.c.bf16 %v285_v42, %v281_v39  ;;  %v280_v46 = vld [vmem:[%s830_s19 + $0xd0] sm:$0xff]  ;;  %v287_v48 = vld [vmem:[%s830_s19 + $0x108] sm:$0xff]  ;;  %v289_v50 = vld [vmem:[%s830_s19 + $0x118] sm:$0xff]  ;;  %v680_v52 = vpack.c.bf16 %v282_v44, %v278_v43 }
  0x1c   : > { %707 = vmatprep.subr.bf16.mxu1 %v706_v32  ;;  %v284_v47 = vld [vmem:[%s830_s19 + $0xf0] sm:$0xff]  ;;  %v291_v49 = vld [vmem:[%s830_s19 + $0x128] sm:$0xff]  ;;  %v293_v51 = vld [vmem:[%s830_s19 + $0x138] sm:$0xff] }
  0x1d   : > { %v712_v53 = vpack.c.bf16 %v284_v47, %v280_v46  ;;  %v682_v54 = vpack.c.bf16 %v291_v49, %v287_v48  ;;  %v286_v55 = vld [vmem:[%s830_s19 + $0x100] sm:$0xff]  ;;  %v288_v57 = vld [vmem:[%s830_s19 + $0x110] sm:$0xff]  ;;  %v714_v58 = vpack.c.bf16 %v293_v51, %v289_v50  ;;  %v295_v60 = vld [vmem:[%s830_s19 + $0x148] sm:$0xff] }
  0x1e   : > { %677 = vmatpush1.bf16.msra.mxu0 %v676_v36  ;;  %v290_v56 = vld [vmem:[%s830_s19 + $0x120] sm:$0xff]  ;;  %v292_v59 = vld [vmem:[%s830_s19 + $0x130] sm:$0xff]  ;;  %v299_v61 = vld [vmem:[%s830_s19 + $0x168] sm:$0xff] }
  0x1f   : > { %709 = vmatpush1.bf16.msra.mxu1 %v708_v40  ;;  %679 = vmatprep.subr.bf16.mxu0 %v678_v41  ;;  %v297_v62 = vld [vmem:[%s830_s19 + $0x158] sm:$0xff]  ;;  %v684_v1 = vpack.c.bf16 %v290_v56, %v286_v55  ;;  %v716_v2 = vpack.c.bf16 %v292_v59, %v288_v57  ;;  %v686_v3 = vpack.c.bf16 %v299_v61, %v295_v60  ;;  %v294_v4 = vld [vmem:[%s830_s19 + $0x140] sm:$0xff]  ;;  %v296_v6 = vld [vmem:[%s830_s19 + $0x150] sm:$0xff] }
  0x20   : > { %711 = vmatprep.subr.bf16.mxu1 %v710_v45  ;;  %v301_v63 = vld [vmem:[%s830_s19 + $0x178] sm:$0xff]  ;;  %v298_v5 = vld [vmem:[%s830_s19 + $0x160] sm:$0xff]  ;;  %v300_v8 = vld [vmem:[%s830_s19 + $0x170] sm:$0xff] }
  0x21   : > { %v718_v7 = vpack.c.bf16 %v301_v63, %v297_v62  ;;  %v303_v9 = vld [vmem:[%s830_s19 + $0x188] sm:$0xff]  ;;  %v305_v11 = vld [vmem:[%s830_s19 + $0x198] sm:$0xff]  ;;  %v688_v13 = vpack.c.bf16 %v298_v5, %v294_v4  ;;  %v302_v14 = vld [vmem:[%s830_s19 + $0x180] sm:$0xff]  ;;  %v720_v15 = vpack.c.bf16 %v300_v8, %v296_v6 }
  0x22   : > { %681 = vmatpush1.bf16.msra.mxu0 %v680_v52  ;;  %v307_v10 = vld [vmem:[%s830_s19 + $0x1a8] sm:$0xff]  ;;  %v309_v12 = vld [vmem:[%s830_s19 + $0x1b8] sm:$0xff]  ;;  %v306_v17 = vld [vmem:[%s830_s19 + $0x1a0] sm:$0xff] }
  0x23   : > { %713 = vmatpush1.bf16.msra.mxu1 %v712_v53  ;;  %683 = vmatprep.subr.bf16.mxu0 %v682_v54  ;;  %v690_v16 = vpack.c.bf16 %v307_v10, %v303_v9  ;;  %v304_v18 = vld [vmem:[%s830_s19 + $0x190] sm:$0xff]  ;;  %v722_v20 = vpack.c.bf16 %v309_v12, %v305_v11  ;;  %v311_v21 = vld [vmem:[%s830_s19 + $0x1c8] sm:$0xff]  ;;  %v318_v23 = vld [vmem:[%s890_s23] sm:$0xff]  ;;  %v692_v27 = vpack.c.bf16 %v306_v17, %v302_v14 }
  0x24   : > { %715 = vmatprep.subr.bf16.mxu1 %v714_v58  ;;  %v308_v19 = vld [vmem:[%s830_s19 + $0x1b0] sm:$0xff]  ;;  %v315_v22 = vld [vmem:[%s830_s19 + $0x1e8] sm:$0xff]  ;;  %v313_v24 = vld [vmem:[%s830_s19 + $0x1d8] sm:$0xff]  ;;  %324 = vperm.xlu0 %756, %v318_v23  }
  0x25   : > { %v317_v25 = vld [vmem:[%s830_s19 + $0x1f8] sm:$0xff]  ;;  %v320_v26 = vld [vmem:[%s890_s23 + $0x10] sm:$0xff]  ;;  %v319_v28 = vld [vmem:[%s890_s23 + $0x8] sm:$0xff]  ;;  %v724_v29 = vpack.c.bf16 %v308_v19, %v304_v18  ;;  %v694_v30 = vpack.c.bf16 %v315_v22, %v311_v21 }
  0x26   : > { %685 = vmatpush1.bf16.msra.mxu0 %v684_v1  ;;  %334 = vperm.xlu1 %757, %v320_v26   ;;  %v310_v31 = vld [vmem:[%s830_s19 + $0x1c0] sm:$0xff]  ;;  %v321_v33 = vld [vmem:[%s890_s23 + $0x18] sm:$0xff]  ;;  %v726_v34 = vpack.c.bf16 %v317_v25, %v313_v24  ;;  %v312_v35 = vld [vmem:[%s830_s19 + $0x1d0] sm:$0xff] }
  0x27   : > { %717 = vmatpush1.bf16.msra.mxu1 %v716_v2  ;;  %687 = vmatprep.subr.bf16.mxu0 %v686_v3  ;;  %v314_v32 = vld [vmem:[%s830_s19 + $0x1e0] sm:$0xff]  ;;  %v316_v36 = vld [vmem:[%s830_s19 + $0x1f0] sm:$0xff]  ;;  %v251_v40 = vld [vmem:[%s234_s26 + $0x8] sm:$0xff] }
  0x28   : > { %719 = vmatprep.subr.bf16.mxu1 %v718_v7  ;;  %329 = vperm.xlu0 %756, %v319_v28   ;;  %v696_v37 = vpack.c.bf16 %v314_v32, %v310_v31  ;;  %v728_v38 = vpack.c.bf16 %v316_v36, %v312_v35  ;;  %v250_v39 = vld [vmem:[%s234_s26] sm:$0xff]  ;;  %v252_v41 = vld [vmem:[%s234_s26 + $0x10] sm:$0xff]  ;;  %v253_v42 = vld [vmem:[%s234_s26 + $0x18] sm:$0xff] }
  0x2a   : > { %689 = vmatpush1.bf16.msra.mxu0 %v688_v13  ;;  %339 = vperm.xlu1 %757, %v321_v33  }
  0x2b   : > { %721 = vmatpush1.bf16.msra.mxu1 %v720_v15  ;;  %691 = vmatprep.subr.bf16.mxu0 %v690_v16 }
  0x2c   : > { %723 = vmatprep.subr.bf16.mxu1 %v722_v20 }
  0x2e   : > { %693 = vmatpush1.bf16.msra.mxu0 %v692_v27 }
  0x2f   : > { %725 = vmatpush1.bf16.msra.mxu1 %v724_v29  ;;  %695 = vmatprep.subr.bf16.mxu0 %v694_v30 }
  0x30   : > { %727 = vmatprep.subr.bf16.mxu1 %v726_v34 }
  0x32   : > { %697 = vmatpush1.bf16.msra.mxu0 %v696_v37 }
  0x33   : > { %729 = vmatpush1.bf16.msra.mxu1 %v728_v38 }
  0x35   : > { %407 = vmatmul.mubr.f32.vlgmr.msra.gmra.mrb[0].mxu0 %v250_v39 }
  0x36   : > { %496 = vmatmul.mubr.f32.vlgmr.msra.gmra.mrb[0].mxu1 %v250_v39  ;;  %412 = vmatprep.mubr.f32.mxu0 %v782_v0 }
  0x37   : > { %501 = vmatprep.mubr.f32.mxu1 %v782_v0 }
  0x39   : > { %413 = vmatmul.mubr.f32.gmra.mrb[2].mxu0 %v251_v40 }
  0x3a   : > { %502 = vmatmul.mubr.f32.gmra.mrb[2].mxu1 %v251_v40  ;;  %418 = vmatprep.mubr.f32.mxu0 %v782_v0 }
  0x3b   : > { %507 = vmatprep.mubr.f32.mxu1 %v782_v0 }
  0x3d   : > { %419 = vmatmul.mubr.f32.gmra.mrb[4].mxu0 %v252_v41 }
  0x3e   : > { %508 = vmatmul.mubr.f32.gmra.mrb[4].mxu1 %v252_v41  ;;  %424 = vmatprep.mubr.f32.mxu0 %v782_v0 }
  0x3f   : > { %513 = vmatprep.mubr.f32.mxu1 %v782_v0 }
  0x41   : > { %425 = vmatmul.mubr.f32.gmra.mrb[6].mxu0 %v253_v42 }
  0x42   : > { %514 = vmatmul.mubr.f32.gmra.mrb[6].mxu1 %v253_v42 }
  0xa3   : > { %v325_v43 = vpop.permute.xlu0 %324 }
  0xa5   : > { %v335_v57 = vpop.permute.xlu1 %334 }
  0xa7   : > { %v330_v50 = vpop.permute.xlu0 %329 }
  0xa9   : > { %v340_v6 = vpop.permute.xlu1 %339 }
 0x108   : > { %v408_v44 = vpop.f32.mrb[0].mxu0 }
 0x109   : > { %v409_v45 = vadd.f32 %v408_v44, %v325_v43  ;;  %v497_v46 = vpop.f32.mrb[0].mxu1  ;;  %v410_v47 = vpop.f32.mrb[1].mxu0 }
 0x10a   : > { %v498_v48 = vadd.f32 %v497_v46, %v325_v43  ;;  %v411_v49 = vadd.f32 %v410_v47, %v325_v43  ;;  %v499_v0 = vpop.f32.mrb[1].mxu1 }
 0x10b   : > { %520 = vst [vmem:[%s923_s30] sm:$0xff] %v409_v45  ;;  %v500_v51 = vadd.f32 %v499_v0, %v325_v43 }
 0x10c   : > { %522 = vst [vmem:[%s923_s30 + $0x10] sm:$0xff] %v498_v48  ;;  %521 = vst [vmem:[%s923_s30 + $0x8] sm:$0xff] %v411_v49  ;;  %v414_v52 = vpop.f32.mrb[2].mxu0 }
 0x10d   : > { %523 = vst [vmem:[%s923_s30 + $0x18] sm:$0xff] %v500_v51  ;;  %v415_v53 = vadd.f32 %v414_v52, %v330_v50  ;;  %v503_v54 = vpop.f32.mrb[2].mxu1  ;;  %v416_v55 = vpop.f32.mrb[3].mxu0 }
 0x10e   : > { %v504_v56 = vadd.f32 %v503_v54, %v330_v50  ;;  %v417_v58 = vadd.f32 %v416_v55, %v330_v50  ;;  %v505_v59 = vpop.f32.mrb[3].mxu1 }
 0x10f   : > { %524 = vst [vmem:[%s923_s30 + $0x20] sm:$0xff] %v415_v53  ;;  %v506_v60 = vadd.f32 %v505_v59, %v330_v50 }
 0x110   : > { %526 = vst [vmem:[%s923_s30 + $0x30] sm:$0xff] %v504_v56  ;;  %525 = vst [vmem:[%s923_s30 + $0x28] sm:$0xff] %v417_v58  ;;  %v420_v61 = vpop.f32.mrb[4].mxu0 }
 0x111   : > { %527 = vst [vmem:[%s923_s30 + $0x38] sm:$0xff] %v506_v60  ;;  %v421_v62 = vadd.f32 %v420_v61, %v335_v57  ;;  %v509_v63 = vpop.f32.mrb[4].mxu1  ;;  %v422_v1 = vpop.f32.mrb[5].mxu0 }
 0x112   : > { %v510_v2 = vadd.f32 %v509_v63, %v335_v57  ;;  %v423_v3 = vadd.f32 %v422_v1, %v335_v57  ;;  %v511_v4 = vpop.f32.mrb[5].mxu1 }
 0x113   : > { %528 = vst [vmem:[%s923_s30 + $0x40] sm:$0xff] %v421_v62  ;;  %v512_v5 = vadd.f32 %v511_v4, %v335_v57 }
 0x114   : > { %530 = vst [vmem:[%s923_s30 + $0x50] sm:$0xff] %v510_v2  ;;  %529 = vst [vmem:[%s923_s30 + $0x48] sm:$0xff] %v423_v3  ;;  %v426_v7 = vpop.f32.mrb[6].mxu0 }
 0x115   : > { %531 = vst [vmem:[%s923_s30 + $0x58] sm:$0xff] %v512_v5  ;;  %v427_v8 = vadd.f32 %v426_v7, %v340_v6  ;;  %v515_v9 = vpop.f32.mrb[6].mxu1  ;;  %v428_v10 = vpop.f32.mrb[7].mxu0 }
 0x116   : > { %v516_v11 = vadd.f32 %v515_v9, %v340_v6  ;;  %v429_v12 = vadd.f32 %v428_v10, %v340_v6  ;;  %v517_v13 = vpop.f32.mrb[7].mxu1 }
 0x117   : > { %532 = vst [vmem:[%s923_s30 + $0x60] sm:$0xff] %v427_v8  ;;  %v518_v14 = vadd.f32 %v517_v13, %v340_v6 }
 0x118   : > { %534 = vst [vmem:[%s923_s30 + $0x70] sm:$0xff] %v516_v11  ;;  %533 = vst [vmem:[%s923_s30 + $0x68] sm:$0xff] %v429_v12 }
 0x119   : > { %535 = vst [vmem:[%s923_s30 + $0x78] sm:$0xff] %v518_v14 }
 0x11a PF: > { %s13_s14 = sadd.s32 1, %s780_s14   ;;  %s954_s12 = smov %s776_s13 }
 0x11b   : > { %p10_p5 = scmp.ge.s32.totalorder %s13_s14, 4   ;;  %s955_s13 = smov %s957_s15 }
 0x11d   :  { %12 = sbr.rel (!%p10_p5) target bundleno = 2 (0x2), region = 68 }

</bundles_post_ra>
